<compile_context>
chip_gen: v6e
topology: v6e:2x2x1
jax: 0.10.0
libtpu: 0.0.40
codegen_flags: <defaults>
</compile_context>

<pallas_src>
import functools

import jax
import jax.numpy as jnp
from jax.experimental import pallas as pl
from jax.experimental.pallas import tpu as pltpu


def _pick_images_per_step(n):
    """Static images-per-grid-step: amortize step overhead but keep >= 2 grid steps."""
    for t in (8, 4, 2):
        if n % t == 0 and n // t >= 2:
            return t
    return 1


@functools.partial(jax.jit, static_argnames=("stride",))
def firstconv3x3_forward(x, weight, gamma, beta, running_mean, running_var,
                         stride=1, eps=1e-5):
    """x: [N, C, H, W] f32; weight: [OUP, C, 3, 3]; BN params: [OUP].  Returns NCHW."""
    n, c, h, w = x.shape
    oup = weight.shape[0]
    hw = h * w
    kdim = 9 * c
    L = (h + 2) * w + 2          # flattened, H-padded, +-1 flat-padded length
    tn = _pick_images_per_step(n)

    # ---------------- wrapper-side prep (all tiny vs. the conv output) ----------------
    # Pad H by 1 top/bottom, flatten spatial dims, then pad the flat axis by 1 on each
    # side so every (ky,kx) tap is the in-bounds contiguous slice
    #   xflat[:, ky*W + kx : ky*W + kx + H*W]
    xh = jnp.pad(x, ((0, 0), (0, 0), (1, 1), (0, 0)))
    xflat = jnp.pad(xh.reshape(n, c, (h + 2) * w), ((0, 0), (0, 0), (1, 1)))

    # Fold eval-mode BN scale into the weights; keep only the shift.
    scale = gamma / jnp.sqrt(running_var + eps)
    shift = (beta - running_mean * scale).reshape(oup, 1)
    # Patch-row order is (ky, kx, c):  column r = (ky*3 + kx)*C + c.
    w_mat = (weight * scale[:, None, None, None]).transpose(0, 2, 3, 1).reshape(oup, kdim)

    # W-border masks: the kx=0 tap must be zero at output column 0, kx=2 at column W-1
    # (in flat space those taps would otherwise read the neighboring row).
    col = jnp.arange(hw, dtype=jnp.int32) % w
    masks = jnp.stack([(col != 0), (col != w - 1)]).astype(jnp.float32)   # [2, HW]

    def kernel(x_ref, w_ref, shift_ref, mask_ref, o_ref, patch_ref):
        for i in range(tn):
            # ---- fused im2col: assemble the [9C, HW] patch matrix in VMEM ----
            for k in range(9):
                ky, kx = divmod(k, 3)
                off = ky * w + kx                       # static lane offset
                sl = x_ref[i, :, off:off + hw]          # [C, HW]
                if kx == 0:
                    sl = sl * mask_ref[0:1, :]
                elif kx == 2:
                    sl = sl * mask_ref[1:2, :]
                patch_ref[k * c:(k + 1) * c, :] = sl
            # ---- conv + BN as one lane-dense GEMM (output already NCHW) ----
            acc = jnp.dot(w_ref[...], patch_ref[...],
                          preferred_element_type=jnp.float32)
            o_ref[i, :, :] = (acc + shift_ref[...]).astype(o_ref.dtype)

    out_flat = pl.pallas_call(
        kernel,
        out_shape=jax.ShapeDtypeStruct((n, oup, hw), jnp.float32),
        grid_spec=pltpu.PrefetchScalarGridSpec(
            num_scalar_prefetch=0,
            grid=(n // tn,),
            in_specs=[
                pl.BlockSpec((tn, c, L), lambda b: (b, 0, 0)),     # activations (flat)
                pl.BlockSpec((oup, kdim), lambda b: (0, 0)),       # BN-folded weights
                pl.BlockSpec((oup, 1), lambda b: (0, 0)),          # BN shift
                pl.BlockSpec((2, hw), lambda b: (0, 0)),           # W-border masks
            ],
            out_specs=pl.BlockSpec((tn, oup, hw), lambda b: (b, 0, 0)),
            scratch_shapes=[pltpu.VMEM((kdim, hw), jnp.float32)],
        ),
        compiler_params=pltpu.CompilerParams(
            dimension_semantics=("parallel",)),
    )(xflat, w_mat, shift, masks)

    out = out_flat.reshape(n, oup, h, w)     # free reshape: layout is already NCHW
    if stride != 1:
        # Correct (out_s[y,x] == out_1[s*y, s*x] for k=3, pad=1), but computes the full
        # stride-1 result.  TODO(synk): fuse stride subsampling in-kernel if this path
        # ever becomes hot (cifar10 firstconv3x3 uses stride=1).
        out = out[:, :, ::stride, ::stride]
    return out


def _reference(x, weight, gamma, beta, running_mean, running_var, stride=1, eps=1e-5):
    y = jax.lax.conv_general_dilated(
        x, weight, window_strides=(stride, stride), padding=((1, 1), (1, 1)),
        dimension_numbers=("NCHW", "OIHW", "NCHW"))
    scale = gamma / jnp.sqrt(running_var + eps)
    shift = beta - running_mean * scale
    return y * scale[None, :, None, None] + shift[None, :, None, None]


if __name__ == "__main__":
    # Module config: firstconv3x3(inp=4, oup=8, stride=1, dataset='cifar10', init_channel_mul=1)
    N, C, H, W = 2, 4, 16, 16
    OUP = 8
    STRIDE = 1

    key = jax.random.PRNGKey(0)
    kx, kw_, kg, kb, km, kv = jax.random.split(key, 6)

    x = jax.random.normal(kx, (N, C, H, W), dtype=jnp.float32)
    weight = jax.random.normal(kw_, (OUP, C, 3, 3), dtype=jnp.float32) * 0.1
    gamma = jax.random.normal(kg, (OUP,), dtype=jnp.float32) * 0.1 + 1.0
    beta = jax.random.normal(kb, (OUP,), dtype=jnp.float32) * 0.1
    running_mean = jax.random.normal(km, (OUP,), dtype=jnp.float32) * 0.1
    running_var = jax.random.uniform(kv, (OUP,), dtype=jnp.float32, minval=0.5, maxval=1.5)

    out = firstconv3x3_forward(x, weight, gamma, beta, running_mean, running_var,
                               stride=STRIDE)
    out = jax.block_until_ready(out)

    ref = _reference(x, weight, gamma, beta, running_mean, running_var, stride=STRIDE)
    assert out.shape == (N, OUP, H, W), out.shape
    assert jnp.allclose(out, ref, atol=1e-4, rtol=1e-4), float(jnp.max(jnp.abs(out - ref)))

    print("KERNEL_OK")
</pallas_src>

<mosaic_0001>
module attributes {stable_mosaic.version = 11 : i64} {
  func.func @kernel(%arg0: i32, %arg1: memref<1x4x290xf32, #tpu.memory_space<vmem>>, %arg2: memref<8x36xf32, #tpu.memory_space<vmem>>, %arg3: memref<8x1xf32, #tpu.memory_space<vmem>>, %arg4: memref<2x256xf32, #tpu.memory_space<vmem>>, %arg5: memref<1x8x256xf32, #tpu.memory_space<vmem>>, %arg6: memref<36x256xf32, #tpu.memory_space<vmem>>) attributes {dimension_semantics = [#tpu.dimension_semantics<parallel>], iteration_bounds = array<i64: 2>, scalar_prefetch = 0 : i64, scratch_operands = 1 : i64, tpu.core_type = #tpu.core_type<tc>, window_params = [{transform_indices = @transform_0, window_bounds = array<i64: 1, 4, 290>}, {pipeline_mode = #tpu.pipeline_mode<synchronous>, transform_indices = @transform_1, window_bounds = array<i64: 8, 36>}, {pipeline_mode = #tpu.pipeline_mode<synchronous>, transform_indices = @transform_2, window_bounds = array<i64: 8, 1>}, {pipeline_mode = #tpu.pipeline_mode<synchronous>, transform_indices = @transform_3, window_bounds = array<i64: 2, 256>}, {transform_indices = @transform_4, window_bounds = array<i64: 1, 8, 256>}]} {
    %c0 = arith.constant 0 : index
    %c0_0 = arith.constant 0 : index
    %c0_1 = arith.constant 0 : index
    %0 = vector.load %arg1[%c0, %c0_0, %c0_1] : memref<1x4x290xf32, #tpu.memory_space<vmem>>, vector<1x4x256xf32>
    %1 = vector.shape_cast %0 : vector<1x4x256xf32> to vector<4x256xf32>
    %c0_2 = arith.constant 0 : index
    %c0_3 = arith.constant 0 : index
    %2 = vector.load %arg4[%c0_2, %c0_3] : memref<2x256xf32, #tpu.memory_space<vmem>>, vector<1x256xf32>
    %3 = vector.broadcast %2 : vector<1x256xf32> to vector<4x256xf32>
    %4 = arith.mulf %1, %3 : vector<4x256xf32>
    %c0_4 = arith.constant 0 : index
    %c0_5 = arith.constant 0 : index
    %5 = vector.load %arg6[%c0_4, %c0_5] : memref<36x256xf32, #tpu.memory_space<vmem>>, vector<4x256xf32>
    tpu.vector_store %arg6[%c0_4, %c0_5], %4 {strides = array<i32>} : memref<36x256xf32, #tpu.memory_space<vmem>>, vector<4x256xf32>,
    %c0_6 = arith.constant 0 : index
    %c0_7 = arith.constant 0 : index
    %c1 = arith.constant 1 : index
    %6 = vector.load %arg1[%c0_6, %c0_7, %c1] : memref<1x4x290xf32, #tpu.memory_space<vmem>>, vector<1x4x256xf32>
    %7 = vector.shape_cast %6 : vector<1x4x256xf32> to vector<4x256xf32>
    %c4 = arith.constant 4 : index
    %c0_8 = arith.constant 0 : index
    %8 = vector.load %arg6[%c4, %c0_8] : memref<36x256xf32, #tpu.memory_space<vmem>>, vector<4x256xf32>
    tpu.vector_store %arg6[%c4, %c0_8], %7 {strides = array<i32>} : memref<36x256xf32, #tpu.memory_space<vmem>>, vector<4x256xf32>,
    %c0_9 = arith.constant 0 : index
    %c0_10 = arith.constant 0 : index
    %c2 = arith.constant 2 : index
    %9 = vector.load %arg1[%c0_9, %c0_10, %c2] : memref<1x4x290xf32, #tpu.memory_space<vmem>>, vector<1x4x256xf32>
    %10 = vector.shape_cast %9 : vector<1x4x256xf32> to vector<4x256xf32>
    %c1_11 = arith.constant 1 : index
    %c0_12 = arith.constant 0 : index
    %11 = vector.load %arg4[%c1_11, %c0_12] : memref<2x256xf32, #tpu.memory_space<vmem>>, vector<1x256xf32>
    %12 = vector.broadcast %11 : vector<1x256xf32> to vector<4x256xf32>
    %13 = arith.mulf %10, %12 : vector<4x256xf32>
    %c8 = arith.constant 8 : index
    %c0_13 = arith.constant 0 : index
    %14 = vector.load %arg6[%c8, %c0_13] : memref<36x256xf32, #tpu.memory_space<vmem>>, vector<4x256xf32>
    tpu.vector_store %arg6[%c8, %c0_13], %13 {strides = array<i32>} : memref<36x256xf32, #tpu.memory_space<vmem>>, vector<4x256xf32>,
    %c0_14 = arith.constant 0 : index
    %c0_15 = arith.constant 0 : index
    %c16 = arith.constant 16 : index
    %15 = vector.load %arg1[%c0_14, %c0_15, %c16] : memref<1x4x290xf32, #tpu.memory_space<vmem>>, vector<1x4x256xf32>
    %16 = vector.shape_cast %15 : vector<1x4x256xf32> to vector<4x256xf32>
    %c0_16 = arith.constant 0 : index
    %c0_17 = arith.constant 0 : index
    %17 = vector.load %arg4[%c0_16, %c0_17] : memref<2x256xf32, #tpu.memory_space<vmem>>, vector<1x256xf32>
    %18 = vector.broadcast %17 : vector<1x256xf32> to vector<4x256xf32>
    %19 = arith.mulf %16, %18 : vector<4x256xf32>
    %c12 = arith.constant 12 : index
    %c0_18 = arith.constant 0 : index
    %20 = vector.load %arg6[%c12, %c0_18] : memref<36x256xf32, #tpu.memory_space<vmem>>, vector<4x256xf32>
    tpu.vector_store %arg6[%c12, %c0_18], %19 {strides = array<i32>} : memref<36x256xf32, #tpu.memory_space<vmem>>, vector<4x256xf32>,
    %c0_19 = arith.constant 0 : index
    %c0_20 = arith.constant 0 : index
    %c17 = arith.constant 17 : index
    %21 = vector.load %arg1[%c0_19, %c0_20, %c17] : memref<1x4x290xf32, #tpu.memory_space<vmem>>, vector<1x4x256xf32>
    %22 = vector.shape_cast %21 : vector<1x4x256xf32> to vector<4x256xf32>
    %c16_21 = arith.constant 16 : index
    %c0_22 = arith.constant 0 : index
    %23 = vector.load %arg6[%c16_21, %c0_22] : memref<36x256xf32, #tpu.memory_space<vmem>>, vector<4x256xf32>
    tpu.vector_store %arg6[%c16_21, %c0_22], %22 {strides = array<i32>} : memref<36x256xf32, #tpu.memory_space<vmem>>, vector<4x256xf32>,
    %c0_23 = arith.constant 0 : index
    %c0_24 = arith.constant 0 : index
    %c18 = arith.constant 18 : index
    %24 = vector.load %arg1[%c0_23, %c0_24, %c18] : memref<1x4x290xf32, #tpu.memory_space<vmem>>, vector<1x4x256xf32>
    %25 = vector.shape_cast %24 : vector<1x4x256xf32> to vector<4x256xf32>
    %c1_25 = arith.constant 1 : index
    %c0_26 = arith.constant 0 : index
    %26 = vector.load %arg4[%c1_25, %c0_26] : memref<2x256xf32, #tpu.memory_space<vmem>>, vector<1x256xf32>
    %27 = vector.broadcast %26 : vector<1x256xf32> to vector<4x256xf32>
    %28 = arith.mulf %25, %27 : vector<4x256xf32>
    %c20 = arith.constant 20 : index
    %c0_27 = arith.constant 0 : index
    %29 = vector.load %arg6[%c20, %c0_27] : memref<36x256xf32, #tpu.memory_space<vmem>>, vector<4x256xf32>
    tpu.vector_store %arg6[%c20, %c0_27], %28 {strides = array<i32>} : memref<36x256xf32, #tpu.memory_space<vmem>>, vector<4x256xf32>,
    %c0_28 = arith.constant 0 : index
    %c0_29 = arith.constant 0 : index
    %c32 = arith.constant 32 : index
    %30 = vector.load %arg1[%c0_28, %c0_29, %c32] : memref<1x4x290xf32, #tpu.memory_space<vmem>>, vector<1x4x256xf32>
    %31 = vector.shape_cast %30 : vector<1x4x256xf32> to vector<4x256xf32>
    %c0_30 = arith.constant 0 : index
    %c0_31 = arith.constant 0 : index
    %32 = vector.load %arg4[%c0_30, %c0_31] : memref<2x256xf32, #tpu.memory_space<vmem>>, vector<1x256xf32>
    %33 = vector.broadcast %32 : vector<1x256xf32> to vector<4x256xf32>
    %34 = arith.mulf %31, %33 : vector<4x256xf32>
    %c24 = arith.constant 24 : index
    %c0_32 = arith.constant 0 : index
    %35 = vector.load %arg6[%c24, %c0_32] : memref<36x256xf32, #tpu.memory_space<vmem>>, vector<4x256xf32>
    tpu.vector_store %arg6[%c24, %c0_32], %34 {strides = array<i32>} : memref<36x256xf32, #tpu.memory_space<vmem>>, vector<4x256xf32>,
    %c0_33 = arith.constant 0 : index
    %c0_34 = arith.constant 0 : index
    %c33 = arith.constant 33 : index
    %36 = vector.load %arg1[%c0_33, %c0_34, %c33] : memref<1x4x290xf32, #tpu.memory_space<vmem>>, vector<1x4x256xf32>
    %37 = vector.shape_cast %36 : vector<1x4x256xf32> to vector<4x256xf32>
    %c28 = arith.constant 28 : index
    %c0_35 = arith.constant 0 : index
    %38 = vector.load %arg6[%c28, %c0_35] : memref<36x256xf32, #tpu.memory_space<vmem>>, vector<4x256xf32>
    tpu.vector_store %arg6[%c28, %c0_35], %37 {strides = array<i32>} : memref<36x256xf32, #tpu.memory_space<vmem>>, vector<4x256xf32>,
    %c0_36 = arith.constant 0 : index
    %c0_37 = arith.constant 0 : index
    %c34 = arith.constant 34 : index
    %39 = vector.load %arg1[%c0_36, %c0_37, %c34] : memref<1x4x290xf32, #tpu.memory_space<vmem>>, vector<1x4x256xf32>
    %40 = vector.shape_cast %39 : vector<1x4x256xf32> to vector<4x256xf32>
    %c1_38 = arith.constant 1 : index
    %c0_39 = arith.constant 0 : index
    %41 = vector.load %arg4[%c1_38, %c0_39] : memref<2x256xf32, #tpu.memory_space<vmem>>, vector<1x256xf32>
    %42 = vector.broadcast %41 : vector<1x256xf32> to vector<4x256xf32>
    %43 = arith.mulf %40, %42 : vector<4x256xf32>
    %c32_40 = arith.constant 32 : index
    %c0_41 = arith.constant 0 : index
    %44 = vector.load %arg6[%c32_40, %c0_41] : memref<36x256xf32, #tpu.memory_space<vmem>>, vector<4x256xf32>
    tpu.vector_store %arg6[%c32_40, %c0_41], %43 {strides = array<i32>} : memref<36x256xf32, #tpu.memory_space<vmem>>, vector<4x256xf32>,
    %c0_42 = arith.constant 0 : index
    %c0_43 = arith.constant 0 : index
    %45 = vector.load %arg2[%c0_42, %c0_43] : memref<8x36xf32, #tpu.memory_space<vmem>>, vector<8x36xf32>
    %c0_44 = arith.constant 0 : index
    %c0_45 = arith.constant 0 : index
    %46 = vector.load %arg6[%c0_44, %c0_45] : memref<36x256xf32, #tpu.memory_space<vmem>>, vector<36x256xf32>
    %cst = arith.constant dense<0.000000e+00> : vector<8x256xf32>
    %47 = tpu.matmul %45, %46, %cst {dimension_numbers = #tpu.dot_dimension_numbers<[1], [0], [0], [1], [0, 0, 1, 1], [], []>} : vector<8x36xf32>, vector<36x256xf32>, vector<8x256xf32> -> vector<8x256xf32>
    %c0_46 = arith.constant 0 : index
    %c0_47 = arith.constant 0 : index
    %48 = vector.load %arg3[%c0_46, %c0_47] : memref<8x1xf32, #tpu.memory_space<vmem>>, vector<8x1xf32>
    %49 = vector.broadcast %48 : vector<8x1xf32> to vector<8x256xf32>
    %50 = arith.addf %47, %49 : vector<8x256xf32>
    %c0_48 = arith.constant 0 : index
    %c0_49 = arith.constant 0 : index
    %c0_50 = arith.constant 0 : index
    %51 = vector.load %arg5[%c0_48, %c0_49, %c0_50] : memref<1x8x256xf32, #tpu.memory_space<vmem>>, vector<1x8x256xf32>
    %52 = vector.shape_cast %51 : vector<1x8x256xf32> to vector<8x256xf32>
    %53 = vector.shape_cast %50 : vector<8x256xf32> to vector<1x8x256xf32>
    tpu.vector_store %arg5[%c0_48, %c0_49, %c0_50], %53 {strides = array<i32>} : memref<1x8x256xf32, #tpu.memory_space<vmem>>, vector<1x8x256xf32>,
    return
  }
  func.func @transform_0(%arg0: i32) -> (i32, i32, i32) {
    %c0_i32 = arith.constant 0 : i32
    %c0_i32_0 = arith.constant 0 : i32
    %c0_i32_1 = arith.constant 0 : i32
    return %arg0, %c0_i32, %c0_i32_0 : i32, i32, i32
  }
  func.func @transform_1(%arg0: i32) -> (i32, i32) {
    %c0_i32 = arith.constant 0 : i32
    %c0_i32_0 = arith.constant 0 : i32
    %c0_i32_1 = arith.constant 0 : i32
    return %c0_i32, %c0_i32_0 : i32, i32
  }
  func.func @transform_2(%arg0: i32) -> (i32, i32) {
    %c0_i32 = arith.constant 0 : i32
    %c0_i32_0 = arith.constant 0 : i32
    %c0_i32_1 = arith.constant 0 : i32
    return %c0_i32, %c0_i32_0 : i32, i32
  }
  func.func @transform_3(%arg0: i32) -> (i32, i32) {
    %c0_i32 = arith.constant 0 : i32
    %c0_i32_0 = arith.constant 0 : i32
    %c0_i32_1 = arith.constant 0 : i32
    return %c0_i32, %c0_i32_0 : i32, i32
  }
  func.func @transform_4(%arg0: i32) -> (i32, i32, i32) {
    %c0_i32 = arith.constant 0 : i32
    %c0_i32_0 = arith.constant 0 : i32
    %c0_i32_1 = arith.constant 0 : i32
    return %arg0, %c0_i32, %c0_i32_0 : i32, i32, i32
  }
}

</mosaic_0001>

<bundles_post_ra>
// kernel: firstconv3x3_forward.1
= control target key start
LH: loop header
LB: loop body
LE: loop exit
PB: predicated region body
PF: predicated region fallthrough
CT: control target
= control target key end

     0   :  { %s717_s15 = smov 0   ;;  %s834_s0 = inlined_call_operand.vmem [shape: f32[2,4,290], index: 0, kind: input, shape index: {}]   ;;  %s835_s1 = inlined_call_operand.vmem [shape: f32[8,36], index: 1, kind: input, shape index: {}]   ;;  %s836_s2 = inlined_call_operand.vmem [shape: f32[8,1], index: 2, kind: input, shape index: {}]   ;;  %s837_s3 = inlined_call_operand.vmem [shape: f32[2,256], index: 3, kind: input, shape index: {}]   ;;  %s838_s4 = inlined_call_operand.vmem [shape: f32[2,8,256], index: 4, kind: output, shape index: {}]  }
   0x1 LB: > { %s622_s16 = sadd.s32 4294967295, %s675_s15   ;;  %p626_p0 = scmp.ge.s32.totalorder %s675_s15, 1  ;;  %s675_s15 = sphi %s717_s15, %s14_s15  }
   0x2   : > { %p162_p1 = scmp.lt.s32.totalorder %s675_s15, 3 }
   0x4   : > { %p163_p2 = pnand %p626_p0, %p162_p1 }
   0x5   : > { %p188_p3 = scmp.lt.s32.totalorder (!%p163_p2), %s622_s16, 1  ;;  %s677_s28 = smov (!%p163_p2), 34  }
   0x6   : > { %166 = sbr.rel (%p163_p2) target bundleno = 500 (0x1f4), region = 36  ;;  %s678_s6 = smov (!%p163_p2), 18  }
   0x7   : > { %s679_s7 = smov (!%p163_p2), 32   ;;  %s680_s8 = smov (!%p163_p2), 2  }
   0x8   : > { %s681_s9 = smov (!%p163_p2), 16   ;;  %s682_s10 = smov (!%p163_p2), 95  }
   0x9   : > { %s683_s11 = smov (!%p163_p2), 111   ;;  %s684_s12 = smov (!%p163_p2), 127  }
   0xa   : > { %s685_s13 = smov (!%p163_p2), 94   ;;  %s686_s14 = smov (!%p163_p2), 96  }
   0xb   : > { %v201_v0 = vlaneseq  ;;  %v632_v2 = vld [vmem:[%s837_s3 + $0x1] ss:$2 sm:$0x3]  ;;  %v373_v6 = vld [vmem:[%s837_s3] ss:$2 sm:$0x3] }
   0xc   : > { %v631_v3 = vld [vmem:[%s837_s3 + $0x1] ss:$2 sm:$0x3]  ;;  %s840_s16 = smov (!%p188_p3, %s622_s16), 1  ;;  %vm387_vm0 = vcmask 261120   ;;  %vm348_vm1 = vcmask 146432  }
   0xd   : > { %v202_v1 = vshrl.u32 %v201_v0, 7  ;;  %v630_v7 = vld [vmem:[%s837_s3 + $0x1] ss:$2 sm:$0x3]  ;;  %s639_s27 = smul.u32 12, %s840_s16  ;;  %vm291_vm2 = vcmask 130048  }
   0xe   : > { %v277_v14 = vld [vmem:[%s837_s3] ss:$2 sm:$0x3]  ;;  %vm444_vm3 = vcmask 277504   ;;  %vm421_vm4 = vcmask 777216   ;;  %vm253_vm5 = vcmask 15360  }
   0xf   : > { %v731_v4 = vsub.s32 0, %v202_v1  ;;  %v733_v5 = vsub.s32 1, %v202_v1  ;;  %s760_s5 = scalar_lea.vmem %s834_s0, %s639_s27  ;;  %v199_v49 = vld [vmem:[%s837_s3] ss:$2 sm:$0x3]  ;;  %s687_s19 = smov 126  }
  0x10   : > { %v667_v24 = vld [vmem:[%s760_s5 + $0x8] ss:$0 sps:$4 sm:$0xff]   ;;  %v764_v25 = vld [vmem:[%s760_s5] sm:$0xff]  ;;  %s688_s20 = smov 110   ;;  %vm325_vm6 = vcmask 908288   ;;  %s689_s21 = smov 112  }
  0x11   : > { %v435_v8 = vrot.slane %v632_v2, %v731_v4  ;;  %v439_v9 = vrot.slane %v632_v2, %v733_v5  ;;  %v339_v10 = vrot.slane %v631_v3, %v731_v4  ;;  %v343_v11 = vrot.slane %v631_v3, %v733_v5  ;;  %v315_v28 = vld [vmem:[%s760_s5 + $0x8] sm:$0xf]  ;;  %s638_s26 = sshll.u32 %s840_s16, 4 }
  0x12   : > { %v378_v12 = vrot.slane %v373_v6, %v731_v4  ;;  %v382_v13 = vrot.slane %v373_v6, %v733_v5  ;;  %v244_v16 = vrot.slane %v630_v7, %v731_v4  ;;  %v248_v17 = vrot.slane %v630_v7, %v733_v5  ;;  %v429_v30 = vld [vmem:[%s760_s5 + $0x8] sm:$0xf]  ;;  %s197_s29 = scalar_lea.vmem %s838_s4, %s638_s26 }
  0x13   : > { %v440_v15 = vcombine.low %v435_v8, %v439_v9  ;;  %v344_v18 = vcombine.low %v339_v10, %v343_v11  ;;  %v282_v20 = vrot.slane %v277_v14, %v731_v4  ;;  %v286_v21 = vrot.slane %v277_v14, %v733_v5  ;;  %v372_v35 = vld [vmem:[%s760_s5 + $0x8] sm:$0xf] }
  0x14   : > { %v383_v19 = vcombine.low %v378_v12, %v382_v13  ;;  %v249_v22 = vcombine.low %v244_v16, %v248_v17  ;;  %v768_v26 = vcombine.low %v764_v25, %v764_v25  ;;  %v318_v27 = vcombine.high %v764_v25, %v764_v25  ;;  %v237_v39 = vld [vmem:[%s760_s5 + $0x8] sm:$0xf] }
  0x15   : > { %441 = vrot.lane.b32.xlu0 %v440_v15, %s677_s28  ;;  %345 = vrot.lane.b32.xlu1 %v344_v18, %s678_s6  ;;  %v287_v23 = vcombine.low %v282_v20, %v286_v21  ;;  %v333_v52 = vld [vmem:[%s760_s5 + $0x8] sm:$0xf]  ;;  %v204_v57 = vrot.slane %v199_v49, %v731_v4  ;;  %v208_v58 = vrot.slane %v199_v49, %v733_v5  ;;  %v691_v20 = vmov 0   ;;  %v477_v21 = vld [vmem:[%s836_s2] sm:$0xff] }
  0x16   : > { %v276_v59 = vld [vmem:[%s760_s5 + $0x8] sm:$0xf]  ;;  %663 = vset.pattern.permute.xlu1 %v691_v20  ;;  %664 = vset.pattern.permute.xlu0 %v691_v20  ;;  %vm364_vm7 = vcmask 900096   ;;  %vm307_vm8 = vcmask 916480   ;;  %vm402_vm9 = vcmask 785408   ;;  %vm459_vm10 = vcmask 769024  }
  0x17   : > { %v209_v5 = vcombine.low %v204_v57, %v208_v58  ;;  %v668_v18 = vld [vmem:[%s760_s5 + $0x8] ss:$0 sps:$4 sm:$0xff]   ;;  %vm268_vm11 = vcmask 1031168   ;;  %vm229_vm12 = vcmask 1039360   ;;  %vm487_vm13 = vcmask 1043456  }
  0x18   : > { %vm483_vm14 = vcmask 293888  }
  0x19   : > { %384 = vrot.lane.b32.xlu0 %v383_v19, %s679_s7  ;;  %250 = vrot.lane.b32.xlu1 %v249_v22, %s680_s8  ;;  %v211_v9 = vmul.f32 %v764_v25, %v209_v5  ;;  %v690_v19 = vmov 0.0  }
  0x1a   : > { %558 = vmatprep.mubr.f32.mxu0 %v690_v19 }
  0x1b   : > { %215 = vst [vmem:[#allocation2 + $0x30] sm:$0xf] %v211_v9  ;;  %v213_v14 = vcombine.high %v211_v9, %v211_v9 }
  0x1d   : > { %288 = vrot.lane.b32.xlu0 %v287_v23, %s681_s9  ;;  %419 = vrot.lane.b32.xlu1 %v667_v24, %s682_s10  ;;  %216 = vst [vmem:[#allocation2] sm:$0xf] %v213_v14 }
  0x21   : > { %417 = vrot.lane.b32.xlu0 %v764_v25, %s682_s10  ;;  %415 = vrot.lane.b32.xlu1 %v768_v26, %s682_s10 }
  0x25   : > { %321 = vrot.lane.b32.xlu0 %v318_v27, %s683_s11  ;;  %323 = vrot.lane.b32.xlu1 %v315_v28, %s683_s11 }
  0x29   : > { %319 = vrot.lane.b32.xlu0 %v764_v25, %s683_s11 }
  0x2d   : > { %225 = vrot.lane.b32.xlu0 %v764_v25, %s684_s12 }
  0x87   : > { %v442_v29 = vpop.permute.xlu0 %441  ;;  %v346_v32 = vpop.permute.xlu1 %345 }
  0x88   : > { %v443_v31 = vrot.slane %v442_v29, 4  ;;  %v347_v36 = vrot.slane %v346_v32, 4 }
  0x8a   : > { %v449_v33 = vmul.f32 %v443_v31, %v429_v30  ;;  %v349_v45 = vsel %vm348_vm1, %v347_v36, %v346_v32  ;;  %v445_v51 = vsel %vm444_vm3, %v443_v31, %v442_v29  ;;  %v353_v63 = vmul.f32 %v347_v36, %v333_v52 }
  0x8b   : > { %v385_v34 = vpop.permute.xlu0 %384  ;;  %v251_v38 = vpop.permute.xlu1 %250  ;;  %v352_v53 = vmul.f32 %v764_v25, %v349_v45  ;;  %v448_v62 = vmul.f32 %v445_v51, %v764_v25 }
  0x8c   : > { %v386_v37 = vrot.slane %v385_v34, 4  ;;  %457 = vrot.lane.b32.xlu0 %v449_v33, %s685_s13  ;;  %v252_v42 = vrot.slane %v251_v38, 4  ;;  %v357_v6 = vcombine.low %v353_v63, %v353_v63 }
  0x8d   : > { %v452_v13 = vcombine.high %v448_v62, %v448_v62  ;;  %v356_v16 = vcombine.low %v352_v53, %v352_v53 }
  0x8e   : > { %v388_v40 = vsel %vm387_vm0, %v386_v37, %v385_v34  ;;  %v392_v41 = vmul.f32 %v386_v37, %v372_v35  ;;  %v258_v46 = vmul.f32 %v252_v42, %v237_v39  ;;  %v254_v1 = vsel %vm253_vm5, %v252_v42, %v251_v38 }
  0x8f   : > { %v391_v43 = vmul.f32 %v764_v25, %v388_v40  ;;  %v289_v44 = vpop.permute.xlu0 %288  ;;  %v420_v48 = vpop.permute.xlu1 %419  ;;  %v257_v7 = vmul.f32 %v764_v25, %v254_v1 }
  0x90   : > { %400 = vrot.lane.b32.xlu1 %v392_v41, %s686_s14  ;;  %v290_v47 = vrot.slane %v289_v44, 4 }
  0x91   : > { %396 = vrot.lane.b32.xlu0 %v391_v43, %s686_s14  ;;  %v395_v12 = vcombine.high %v391_v43, %v391_v43  ;;  %v261_v15 = vcombine.high %v257_v7, %v257_v7 }
  0x92   : > { %v292_v50 = vsel %vm291_vm2, %v290_v47, %v289_v44  ;;  %v296_v2 = vmul.f32 %v290_v47, %v276_v59 }
  0x93   : > { %v418_v54 = vpop.permute.xlu0 %417  ;;  %v416_v56 = vpop.permute.xlu1 %415  ;;  %v295_v60 = vmul.f32 %v764_v25, %v292_v50 }
  0x94   : > { %266 = vrot.lane.b32.xlu1 %v258_v46, %s687_s19  ;;  %v423_v55 = vsel %vm421_vm4, %v418_v54, %v420_v48  ;;  %v422_v61 = vsel %vm421_vm4, %v416_v56, %v418_v54  ;;  %v300_v10 = vcombine.low %v296_v2, %v296_v2 }
  0x95   : > { %360 = vrot.lane.b32.xlu0 %v352_v53, %s688_s20  ;;  %427 = vst [vmem:[#allocation2 + $0x20] sm:$0xf0] %v423_v55  ;;  %426 = vst [vmem:[#allocation2 + $0x8] sm:$0xf0] %v422_v61  ;;  %v299_v17 = vcombine.low %v295_v60, %v295_v60  ;;  %v466_v61 = vld [vmem:[%s835_s1] sm:$0xff] }
  0x97   : > { %v322_v0 = vpop.permute.xlu0 %321  ;;  %v324_v3 = vpop.permute.xlu1 %323 }
  0x98   : > { %453 = vrot.lane.b32.xlu1 %v448_v62, %s685_s13  ;;  %v327_v4 = vsel %vm325_vm6, %v322_v0, %v324_v3 }
  0x99   : > { %303 = vrot.lane.b32.xlu0 %v295_v60, %s689_s21  ;;  %331 = vst [vmem:[#allocation2 + $0x28] sm:$0xf] %v327_v4 }
  0x9b   : > { %v320_v8 = vpop.permute.xlu0 %319 }
  0x9c   : > { %362 = vrot.lane.b32.xlu1 %v357_v6, %s688_s20  ;;  %v326_v11 = vsel %vm325_vm6, %v320_v8, %v322_v0 }
  0x9d   : > { %262 = vrot.lane.b32.xlu0 %v257_v7, %s687_s19  ;;  %330 = vst [vmem:[#allocation2 + $0x48] sm:$0xf] %v326_v11 }
  0x9f   : > { %v226_v22 = vpop.permute.xlu0 %225 }
  0xa0   : > { %305 = vrot.lane.b32.xlu1 %v300_v10, %s689_s21 }
  0xa1   : > { %398 = vrot.lane.b32.xlu0 %v395_v12, %s686_s14 }
  0xa4   : > { %455 = vrot.lane.b32.xlu1 %v452_v13, %s685_s13 }
  0xa5   : > { %264 = vrot.lane.b32.xlu0 %v261_v15, %s687_s19 }
  0xa8   : > { %358 = vrot.lane.b32.xlu1 %v356_v16, %s688_s20 }
  0xa9   : > { %223 = vrot.lane.b32.xlu0 %v768_v26, %s684_s12 }
  0xac   : > { %301 = vrot.lane.b32.xlu1 %v299_v17, %s689_s21 }
  0xb0   : > { %227 = vrot.lane.b32.xlu1 %v668_v18, %s684_s12 }
  0xb4   : > { %480 = vperm.xlu1 %663, %v477_v21  }
  0xfe   : > { %v458_v23 = vpop.permute.xlu0 %457 }
 0x102   : > { %v401_v24 = vpop.permute.xlu1 %400 }
 0x103   : > { %v397_v25 = vpop.permute.xlu0 %396 }
 0x106   : > { %v267_v26 = vpop.permute.xlu1 %266 }
 0x107   : > { %v361_v27 = vpop.permute.xlu0 %360 }
 0x10a   : > { %v454_v28 = vpop.permute.xlu1 %453 }
 0x10b   : > { %v304_v29 = vpop.permute.xlu0 %303 }
 0x10e   : > { %v363_v30 = vpop.permute.xlu1 %362 }
 0x10f   : > { %v366_v31 = vsel %vm364_vm7, %v361_v27, %v363_v30  ;;  %v263_v32 = vpop.permute.xlu0 %262 }
 0x110   : > { %370 = vst [vmem:[#allocation2 + $0x28] sm:$0xf0] %v366_v31 }
 0x112   : > { %v306_v33 = vpop.permute.xlu1 %305 }
 0x113   : > { %v309_v34 = vsel %vm307_vm8, %v304_v29, %v306_v33  ;;  %v399_v35 = vpop.permute.xlu0 %398 }
 0x114   : > { %313 = vst [vmem:[#allocation2 + $0x10] sm:$0xf0] %v309_v34  ;;  %v403_v36 = vsel %vm402_vm9, %v397_v25, %v399_v35  ;;  %v404_v37 = vsel %vm402_vm9, %v399_v35, %v401_v24 }
 0x115   : > { %407 = vst [vmem:[#allocation2 + $0x8] sm:$0xf] %v403_v36  ;;  %408 = vst [vmem:[#allocation2 + $0x20] sm:$0xf] %v404_v37 }
 0x116   : > { %v456_v38 = vpop.permute.xlu1 %455 }
 0x117   : > { %v460_v39 = vsel %vm459_vm10, %v454_v28, %v456_v38  ;;  %v461_v40 = vsel %vm459_vm10, %v456_v38, %v458_v23  ;;  %v265_v41 = vpop.permute.xlu0 %264  ;;  %v472_v56 = vld [vmem:[#allocation2 + $0x28] sm:$0xff] }
 0x118   : > { %464 = vst [vmem:[#allocation2 + $0x40] sm:$0xf] %v460_v39  ;;  %465 = vst [vmem:[#allocation2 + $0x38] sm:$0xf] %v461_v40  ;;  %v269_v42 = vsel %vm268_vm11, %v263_v32, %v265_v41  ;;  %v270_v43 = vsel %vm268_vm11, %v265_v41, %v267_v26 }
 0x119   : > { %273 = vst [vmem:[#allocation2 + $0x18] sm:$0xf] %v269_v42  ;;  %274 = vst [vmem:[#allocation2 + $0x10] sm:$0xf] %v270_v43 }
 0x11a   : > { %v359_v44 = vpop.permute.xlu1 %358 }
 0x11b   : > { %v365_v45 = vsel %vm364_vm7, %v359_v44, %v361_v27  ;;  %v224_v46 = vpop.permute.xlu0 %223 }
 0x11c   : > { %369 = vst [vmem:[#allocation2 + $0x48] sm:$0xf0] %v365_v45  ;;  %v230_v47 = vsel %vm229_vm12, %v224_v46, %v226_v22  ;;  %v474_v52 = vld [vmem:[#allocation2 + $0x20] sm:$0xff]  ;;  %v473_v54 = vld [vmem:[#allocation2 + $0x8] sm:$0xff] }
 0x11d   : > { %234 = vst [vmem:[#allocation2 + $0x30] sm:$0xf0] %v230_v47 }
 0x11e   : > { %v302_v48 = vpop.permute.xlu1 %301 }
 0x11f   : > { %v308_v49 = vsel %vm307_vm8, %v302_v48, %v304_v29  ;;  %v476_v50 = vld [vmem:[#allocation2 + $0x38] sm:$0xf]  ;;  %v475_v51 = vld [vmem:[#allocation2 + $0x40] sm:$0xf] }
 0x120   : > { %312 = vst [vmem:[#allocation2 + $0x18] sm:$0xf0] %v308_v49  ;;  %633 = vmatprep.subr.msk.mxu0 %vm487_vm13, %v476_v50  ;;  %v470_v58 = vld [vmem:[#allocation2 + $0x10] sm:$0xff] }
 0x121   : > { %634 = vmatpush1.msk.msra.mxu0 %vm487_vm13, %v475_v51 }
 0x122   : > { %v228_v53 = vpop.permute.xlu1 %227  ;;  %518 = vmatprep.subr.mxu0 %v474_v52 }
 0x123   : > { %v231_v55 = vsel %vm229_vm12, %v226_v22, %v228_v53  ;;  %519 = vmatpush1.msra.mxu0 %v473_v54  ;;  %v471_v57 = vld [vmem:[#allocation2 + $0x48] sm:$0xff] }
 0x124   : > { %235 = vst [vmem:[#allocation2] sm:$0xf0] %v231_v55  ;;  %520 = vmatprep.subr.mxu0 %v472_v56  ;;  %v467_v62 = vld [vmem:[#allocation2 + $0x30] sm:$0xff] }
 0x125   : > { %521 = vmatpush1.msra.mxu0 %v471_v57 }
 0x126   : > { %522 = vmatprep.subr.mxu0 %v470_v58 }
 0x127   : > { %v469_v59 = vld [vmem:[#allocation2 + $0x18] sm:$0xff] }
 0x128   : > { %523 = vmatpush1.msra.mxu0 %v469_v59 }
 0x12b   : > { %v468_v60 = vld [vmem:[#allocation2] sm:$0xff] }
 0x12c   : > { %524 = vmatprep.subr.mxu0 %v468_v60 }
 0x12d   : > { %525 = vmatpush1.msra.mxu0 %v467_v62 }
 0x12e   : > { %635 = vmatmul.mubr.msk.f32.vlgmr.msra.gmra.mxu0 %vm483_vm14, %v466_v61 }
 0x12f   : > { %v481_v63 = vpop.permute.xlu1 %480 }
 0x1ee   : > { %v560_v0 = vpop.f32.mrf.mxu0 }
 0x1ef   : > { %v561_v1 = vadd.f32 %v560_v0, %v481_v63 }
 0x1f0   : > { %v562_v2 = vpop.f32.mrf.mxu0 }
 0x1f1   : > { %565 = vst [vmem:[%s197_s29] sm:$0xff] %v561_v1  ;;  %v563_v3 = vadd.f32 %v562_v2, %v481_v63 }
 0x1f3   : > { %566 = vst [vmem:[%s197_s29 + $0x8] sm:$0xff] %v563_v3 }
 0x1f4 PF: > { %s14_s15 = sadd.s32 1, %s675_s15  }
 0x1f5   : > { %p11_p4 = scmp.ge.s32.totalorder %s14_s15, 4  }
 0x1f7   :  { %13 = sbr.rel (!%p11_p4) target bundleno = 1 (0x1), region = 67 }

</bundles_post_ra>
